<compile_context>
chip_gen: v5e
topology: v5e:2x2
jax: 0.10.0
libtpu: 0.0.40
codegen_flags: <defaults>
</compile_context>

<pallas_src>
import functools

import jax
import jax.numpy as jnp
import numpy as np
from jax.experimental import pallas as pl
from jax.experimental.pallas import tpu as pltpu

KSIZE = 7
SIGMA = 5.0
PAD = (KSIZE - 1) // 2
LANE = 128
SUBLANE = 8


def _gaussian_1d(ksize: int, sigma: float) -> np.ndarray:
    """Normalized 1D Gaussian; outer(g1, g1) == proj3's 2D Gaussian kernel."""
    coords = np.arange(ksize, dtype=np.float64) - (ksize - 1) / 2.0
    g = np.exp(-(coords ** 2) / (2.0 * sigma ** 2))
    return g / g.sum()


# Compile-time constant taps (fold to splat immediates inside the kernel).
_G1 = tuple(float(v) for v in _gaussian_1d(KSIZE, SIGMA))


def _round_up(v: int, m: int) -> int:
    return ((v + m - 1) // m) * m


def _separable_gauss_kernel(x_ref, o_ref, *, tile_h: int, W: int):
    """One (plane b, H-tile hi) step of the depthwise 7x7 Gaussian blur.

    x_ref: (1, H + 2*PAD, W + 2*PAD)  zero-halo-padded plane for one (image,
           channel); the index_map ignores hi, so it is DMA'd once per plane
           and stays resident in VMEM across all H tiles of that plane.
    o_ref: (1, tile_h, W)             output tile (W on the lane dim).
    """
    hi = pl.program_id(1)
    rows = tile_h + 2 * PAD
    r0 = pl.multiple_of(hi * tile_h, tile_h)

    # Pass 1: horizontal (W / lane) Gaussian.  Seven lane-offset reads straight
    # from the resident VMEM block, accumulated in registers (no VMEM RMW).
    row = _G1[0] * x_ref[0, pl.ds(r0, rows), 0:W].astype(jnp.float32)
    for kj in range(1, KSIZE):
        row = row + _G1[kj] * x_ref[0, pl.ds(r0, rows), kj:kj + W].astype(jnp.float32)

    # Pass 2: vertical (H / sublane) Gaussian.  Sublane-offset slices of the
    # in-register row-pass result; single store of the finished tile.
    acc = _G1[0] * row[0:tile_h, :]
    for ki in range(1, KSIZE):
        acc = acc + _G1[ki] * row[ki:ki + tile_h, :]
    o_ref[0, :, :] = acc.astype(o_ref.dtype)


def _pick_tile_h(H: int, W: int, budget_bytes: int = 128 * 1024) -> int:
    """Largest H tile whose f32 register working set (~(2*th+6)*Wl*4 B) fits."""
    w_lanes = max(1, -(-W // LANE)) * LANE
    cap = max(SUBLANE, (budget_bytes // (4 * w_lanes) - 2 * PAD) // 2)
    if H <= cap:
        return H                      # whole height in one tile (nh == 1)
    best = 0
    for th in range(SUBLANE, cap + 1, SUBLANE):
        if H % th == 0:
            best = th
    if best:
        return best
    # TODO(synk): awkward H (no multiple-of-8 divisor <= cap) falls back to a
    # single full-height tile and may spill registers for very large planes.
    return H


def second_moment_matrix_layer(x: jnp.ndarray) -> jnp.ndarray:
    """x: (N, 3, H, W) float  ->  (N, 3, H, W): S_xx, S_yy, S_xy."""
    N, C, H, W = x.shape
    B = N * C
    tile_h = _pick_tile_h(H, W)
    nh = H // tile_h

    # (N, C, H, W) -> (B, H, W) is a free view.  The only remaining HBM layout
    # pass is the 3-pixel zero halo pad (both transposes of the old version are
    # gone).  TODO(synk): absorb this pad too with in-kernel masked edge taps.
    xpad = jnp.pad(x.reshape(B, H, W), ((0, 0), (PAD, PAD), (PAD, PAD)))

    kernel = functools.partial(_separable_gauss_kernel, tile_h=tile_h, W=W)

    itemsize = jnp.dtype(x.dtype).itemsize
    in_block = _round_up(H + 2 * PAD, SUBLANE) * _round_up(W + 2 * PAD, LANE) * itemsize
    out_block = _round_up(tile_h, SUBLANE) * _round_up(W, LANE) * itemsize
    vmem_need = 2 * (in_block + out_block)            # double-buffered blocks
    vmem_limit = int(min(max(vmem_need + (4 << 20), 16 << 20), 48 << 20))  # v7x-safe

    flops = 2 * (2 * KSIZE) * H * W * B               # 14 FMAs per output pixel
    bytes_accessed = itemsize * (B * (H + 2 * PAD) * (W + 2 * PAD) + B * H * W)

    out = pl.pallas_call(
        kernel,
        out_shape=jax.ShapeDtypeStruct((B, H, W), x.dtype),
        grid_spec=pltpu.PrefetchScalarGridSpec(
            num_scalar_prefetch=0,
            grid=(B, nh),
            in_specs=[
                # Full padded plane for one (image, channel); block index ignores
                # hi so it is fetched once per plane and revisited across tiles.
                pl.BlockSpec((1, H + 2 * PAD, W + 2 * PAD),
                             lambda b, hi: (b, 0, 0)),
            ],
            out_specs=pl.BlockSpec((1, tile_h, W), lambda b, hi: (b, hi, 0)),
        ),
        compiler_params=pltpu.CompilerParams(
            # Plane axis shards across v7x's two TensorCores (B = N*3 >= 3);
            # the resident-input H-tile axis stays sequential.
            dimension_semantics=("parallel", "arbitrary"),
            vmem_limit_bytes=vmem_limit,
        ),
        cost_estimate=pl.CostEstimate(flops=int(flops), transcendentals=0,
                                      bytes_accessed=int(bytes_accessed)),
    )(xpad)

    return out.reshape(N, C, H, W)


def _reference(x: jnp.ndarray) -> jnp.ndarray:
    """Pure-JAX reference: grouped conv identical to F.conv2d(..., groups=3)."""
    g1 = _gaussian_1d(KSIZE, SIGMA)
    g2 = np.outer(g1, g1)
    g2 = g2 / g2.sum()
    w = jnp.broadcast_to(jnp.asarray(g2, jnp.float32)[None, None],
                         (3, 1, KSIZE, KSIZE))
    return jax.lax.conv_general_dilated(
        x, w,
        window_strides=(1, 1),
        padding=((PAD, PAD), (PAD, PAD)),
        dimension_numbers=("NCHW", "OIHW", "NCHW"),
        feature_group_count=3,
        precision=jax.lax.Precision.HIGHEST,
    )


if __name__ == "__main__":
    key = jax.random.PRNGKey(0)
    N, C, H, W = 2, 3, 16, 16   # module expects exactly 3 channels (I_xx, I_yy, I_xy)
    x = jax.random.normal(key, (N, C, H, W), dtype=jnp.float32)

    fwd = jax.jit(second_moment_matrix_layer)
    out = jax.block_until_ready(fwd(x))
    ref = jax.block_until_ready(_reference(x))

    assert out.shape == (N, C, H, W)
    np.testing.assert_allclose(np.asarray(out), np.asarray(ref), rtol=1e-5, atol=1e-5)

    print("KERNEL_OK")
</pallas_src>

<mosaic_0001>
module attributes {stable_mosaic.version = 11 : i64} {
  func.func @_separable_gauss_kernel(%arg0: i32, %arg1: i32, %arg2: memref<1x22x22xf32, #tpu.memory_space<vmem>>, %arg3: memref<1x16x16xf32, #tpu.memory_space<vmem>>) attributes {dimension_semantics = [#tpu.dimension_semantics<parallel>, #tpu.dimension_semantics<arbitrary>], iteration_bounds = array<i64: 6, 1>, scalar_prefetch = 0 : i64, scratch_operands = 0 : i64, tpu.core_type = #tpu.core_type<tc>, window_params = [{transform_indices = @transform_0, window_bounds = array<i64: 1, 22, 22>}, {transform_indices = @transform_1, window_bounds = array<i64: 1, 16, 16>}]} {
    %c16_i32 = arith.constant 16 : i32
    %0 = arith.muli %arg1, %c16_i32 : i32
    %1 = tpu.assume_multiple %0, 16 : i32
    %c0 = arith.constant 0 : index
    %2 = arith.index_cast %1 : i32 to index
    %c0_0 = arith.constant 0 : index
    %3 = vector.load %arg2[%c0, %2, %c0_0] : memref<1x22x22xf32, #tpu.memory_space<vmem>>, vector<1x22x16xf32>
    %4 = vector.shape_cast %3 : vector<1x22x16xf32> to vector<22x16xf32>
    %cst = arith.constant 0.128956035 : f32
    %5 = vector.broadcast %cst : f32 to vector<22x16xf32>
    %6 = arith.mulf %5, %4 : vector<22x16xf32>
    %c0_1 = arith.constant 0 : index
    %7 = arith.index_cast %1 : i32 to index
    %c1 = arith.constant 1 : index
    %8 = vector.load %arg2[%c0_1, %7, %c1] : memref<1x22x22xf32, #tpu.memory_space<vmem>>, vector<1x22x16xf32>
    %9 = vector.shape_cast %8 : vector<1x22x16xf32> to vector<22x16xf32>
    %cst_2 = arith.constant 0.142518461 : f32
    %10 = vector.broadcast %cst_2 : f32 to vector<22x16xf32>
    %11 = arith.mulf %10, %9 : vector<22x16xf32>
    %12 = arith.addf %6, %11 : vector<22x16xf32>
    %c0_3 = arith.constant 0 : index
    %13 = arith.index_cast %1 : i32 to index
    %c2 = arith.constant 2 : index
    %14 = vector.load %arg2[%c0_3, %13, %c2] : memref<1x22x22xf32, #tpu.memory_space<vmem>>, vector<1x22x16xf32>
    %15 = vector.shape_cast %14 : vector<1x22x16xf32> to vector<22x16xf32>
    %cst_4 = arith.constant 0.151331306 : f32
    %16 = vector.broadcast %cst_4 : f32 to vector<22x16xf32>
    %17 = arith.mulf %16, %15 : vector<22x16xf32>
    %18 = arith.addf %12, %17 : vector<22x16xf32>
    %c0_5 = arith.constant 0 : index
    %19 = arith.index_cast %1 : i32 to index
    %c3 = arith.constant 3 : index
    %20 = vector.load %arg2[%c0_5, %19, %c3] : memref<1x22x22xf32, #tpu.memory_space<vmem>>, vector<1x22x16xf32>
    %21 = vector.shape_cast %20 : vector<1x22x16xf32> to vector<22x16xf32>
    %cst_6 = arith.constant 0.154388398 : f32
    %22 = vector.broadcast %cst_6 : f32 to vector<22x16xf32>
    %23 = arith.mulf %22, %21 : vector<22x16xf32>
    %24 = arith.addf %18, %23 : vector<22x16xf32>
    %c0_7 = arith.constant 0 : index
    %25 = arith.index_cast %1 : i32 to index
    %c4 = arith.constant 4 : index
    %26 = vector.load %arg2[%c0_7, %25, %c4] : memref<1x22x22xf32, #tpu.memory_space<vmem>>, vector<1x22x16xf32>
    %27 = vector.shape_cast %26 : vector<1x22x16xf32> to vector<22x16xf32>
    %cst_8 = arith.constant 0.151331306 : f32
    %28 = vector.broadcast %cst_8 : f32 to vector<22x16xf32>
    %29 = arith.mulf %28, %27 : vector<22x16xf32>
    %30 = arith.addf %24, %29 : vector<22x16xf32>
    %c0_9 = arith.constant 0 : index
    %31 = arith.index_cast %1 : i32 to index
    %c5 = arith.constant 5 : index
    %32 = vector.load %arg2[%c0_9, %31, %c5] : memref<1x22x22xf32, #tpu.memory_space<vmem>>, vector<1x22x16xf32>
    %33 = vector.shape_cast %32 : vector<1x22x16xf32> to vector<22x16xf32>
    %cst_10 = arith.constant 0.142518461 : f32
    %34 = vector.broadcast %cst_10 : f32 to vector<22x16xf32>
    %35 = arith.mulf %34, %33 : vector<22x16xf32>
    %36 = arith.addf %30, %35 : vector<22x16xf32>
    %c0_11 = arith.constant 0 : index
    %37 = arith.index_cast %1 : i32 to index
    %c6 = arith.constant 6 : index
    %38 = vector.load %arg2[%c0_11, %37, %c6] : memref<1x22x22xf32, #tpu.memory_space<vmem>>, vector<1x22x16xf32>
    %39 = vector.shape_cast %38 : vector<1x22x16xf32> to vector<22x16xf32>
    %cst_12 = arith.constant 0.128956035 : f32
    %40 = vector.broadcast %cst_12 : f32 to vector<22x16xf32>
    %41 = arith.mulf %40, %39 : vector<22x16xf32>
    %42 = arith.addf %36, %41 : vector<22x16xf32>
    %43 = vector.extract_strided_slice %42 {offsets = [0, 0], sizes = [16, 16], strides = [1, 1]} : vector<22x16xf32> to vector<16x16xf32>
    %cst_13 = arith.constant 0.128956035 : f32
    %44 = vector.broadcast %cst_13 : f32 to vector<16x16xf32>
    %45 = arith.mulf %44, %43 : vector<16x16xf32>
    %46 = vector.extract_strided_slice %42 {offsets = [1, 0], sizes = [16, 16], strides = [1, 1]} : vector<22x16xf32> to vector<16x16xf32>
    %cst_14 = arith.constant 0.142518461 : f32
    %47 = vector.broadcast %cst_14 : f32 to vector<16x16xf32>
    %48 = arith.mulf %47, %46 : vector<16x16xf32>
    %49 = arith.addf %45, %48 : vector<16x16xf32>
    %50 = vector.extract_strided_slice %42 {offsets = [2, 0], sizes = [16, 16], strides = [1, 1]} : vector<22x16xf32> to vector<16x16xf32>
    %cst_15 = arith.constant 0.151331306 : f32
    %51 = vector.broadcast %cst_15 : f32 to vector<16x16xf32>
    %52 = arith.mulf %51, %50 : vector<16x16xf32>
    %53 = arith.addf %49, %52 : vector<16x16xf32>
    %54 = vector.extract_strided_slice %42 {offsets = [3, 0], sizes = [16, 16], strides = [1, 1]} : vector<22x16xf32> to vector<16x16xf32>
    %cst_16 = arith.constant 0.154388398 : f32
    %55 = vector.broadcast %cst_16 : f32 to vector<16x16xf32>
    %56 = arith.mulf %55, %54 : vector<16x16xf32>
    %57 = arith.addf %53, %56 : vector<16x16xf32>
    %58 = vector.extract_strided_slice %42 {offsets = [4, 0], sizes = [16, 16], strides = [1, 1]} : vector<22x16xf32> to vector<16x16xf32>
    %cst_17 = arith.constant 0.151331306 : f32
    %59 = vector.broadcast %cst_17 : f32 to vector<16x16xf32>
    %60 = arith.mulf %59, %58 : vector<16x16xf32>
    %61 = arith.addf %57, %60 : vector<16x16xf32>
    %62 = vector.extract_strided_slice %42 {offsets = [5, 0], sizes = [16, 16], strides = [1, 1]} : vector<22x16xf32> to vector<16x16xf32>
    %cst_18 = arith.constant 0.142518461 : f32
    %63 = vector.broadcast %cst_18 : f32 to vector<16x16xf32>
    %64 = arith.mulf %63, %62 : vector<16x16xf32>
    %65 = arith.addf %61, %64 : vector<16x16xf32>
    %66 = vector.extract_strided_slice %42 {offsets = [6, 0], sizes = [16, 16], strides = [1, 1]} : vector<22x16xf32> to vector<16x16xf32>
    %cst_19 = arith.constant 0.128956035 : f32
    %67 = vector.broadcast %cst_19 : f32 to vector<16x16xf32>
    %68 = arith.mulf %67, %66 : vector<16x16xf32>
    %69 = arith.addf %65, %68 : vector<16x16xf32>
    %c0_20 = arith.constant 0 : index
    %c0_21 = arith.constant 0 : index
    %c0_22 = arith.constant 0 : index
    %70 = vector.load %arg3[%c0_20, %c0_21, %c0_22] : memref<1x16x16xf32, #tpu.memory_space<vmem>>, vector<1x16x16xf32>
    %71 = vector.shape_cast %70 : vector<1x16x16xf32> to vector<16x16xf32>
    %72 = vector.shape_cast %69 : vector<16x16xf32> to vector<1x16x16xf32>
    tpu.vector_store %arg3[%c0_20, %c0_21, %c0_22], %72 {strides = array<i32>} : memref<1x16x16xf32, #tpu.memory_space<vmem>>, vector<1x16x16xf32>,
    return
  }
  func.func @transform_0(%arg0: i32, %arg1: i32) -> (i32, i32, i32) {
    %c0_i32 = arith.constant 0 : i32
    %c0_i32_0 = arith.constant 0 : i32
    %c0_i32_1 = arith.constant 0 : i32
    return %arg0, %c0_i32, %c0_i32_0 : i32, i32, i32
  }
  func.func @transform_1(%arg0: i32, %arg1: i32) -> (i32, i32, i32) {
    %c0_i32 = arith.constant 0 : i32
    %c0_i32_0 = arith.constant 0 : i32
    return %arg0, %arg1, %c0_i32 : i32, i32, i32
  }
}

</mosaic_0001>

<bundles_post_ra>
// kernel: second_moment_matrix_layer.1
= control target key start
LH: loop header
LB: loop body
LE: loop exit
PB: predicated region body
PF: predicated region fallthrough
CT: control target
= control target key end

     0   :  { %6 = vsyncpa [#allocation3], 0  ;;  %s699_s0 = inlined_call_operand.vmem [shape: f32[6,22,22], index: 0, kind: input, shape index: {}]   ;;  %s700_s1 = inlined_call_operand.hbm [shape: f32[6,16,16], index: 1, kind: output, shape index: {}]  }
   0x1   :  { %8 = vsyncpa [#allocation3 + $0x1], 0  ;;  %s586_s6 = smov 0   ;;  %s588_s7 = smov 0  }
   0x2   :  { %s590_s8 = smov 0   ;;  %s592_s9 = smov 0  }
   0x3   :  { %s594_s10 = smov 0   ;;  %s596_s11 = smov 0  }
   0x4 LB: > { %s411_s12 = sadd.s32 4294967295, %s566_s11   ;;  %s412_s13 = sadd.s32 4294967294, %s566_s11   ;;  %s566_s11 = sphi %s596_s11, %s14_s11   ;;  %s562_s10 = sphi %s594_s10, %s707_s10   ;;  %s558_s9 = sphi %s592_s9, %s706_s9   ;;  %s554_s8 = sphi %s590_s8, %s705_s8   ;;  %s550_s7 = sphi %s588_s7, %s704_s7   ;;  %s546_s6 = sphi %s586_s6, %s703_s6  }
   0x5   : > { %s26_s14 = sadd.s32 1, %s562_s10  ;;  %s61_s15 = sadd.s32 1, %s554_s8 }
   0x6   : > { %p28_p0 = scmp.ge.s32.totalorder %s26_s14, 6  ;;  %p71_p1 = scmp.ne.s32.totalorder %s554_s8, %s550_s7 }
   0x7   : > { %p72_p2 = scmp.eq.s32.totalorder %s411_s12, 5  ;;  %p77_p3 = scmp.ne.s32.totalorder %s550_s7, %s546_s6 }
   0x8   : > { %s709_s14 = smov (%p28_p0, %s26_s14), 0  ;;  %p78_p5 = scmp.eq.s32.totalorder %s412_s13, 5 }
   0x9   : > { %p626_p4 = por %p72_p2, %p71_p1  ;;  %s56_s17 = ssub.s32 %s562_s10, %s709_s14 }
   0xa   : > { %p415_p6 = scmp.ge.s32.totalorder %s566_s11, 1  ;;  %p59_p7 = scmp.eq.s32.totalorder %s56_s17, 0 }
   0xb   : > { %p633_p8 = por %p78_p5, %p77_p3  ;;  %p104_p9 = scmp.lt.s32.totalorder %s566_s11, 7 }
   0xc   : > { %s639_s19 = scalar_select %p59_p7, %s554_s8, %s61_s15  }
   0xd   : > { %p105_p10 = pnand %p415_p6, %p104_p9 }
   0xe   : > { %p124_p11 = scmp.lt.s32.totalorder (!%p105_p10), %s558_s9, 5  ;;  %s568_s25 = smov (!%p105_p10), 127  }
   0xf   : > { %108 = sbr.rel (%p105_p10) target bundleno = 207 (0xcf), region = 24  ;;  %s569_s26 = smov (!%p105_p10), 126  }
  0x10   : > { %s570_s27 = smov (!%p105_p10), 125   ;;  %s571_s28 = smov (!%p105_p10), 124  }
  0x11   : > { %s572_s29 = smov (!%p105_p10), 123   ;;  %s573_s30 = smov (!%p105_p10), 122  }
  0x12   : > { %s121_s2 = sand.u32 (!%p105_p10), 1, %s550_s7   ;;  %s423_s4 = sshll.u32 (!%p105_p10), %s558_s9, 4 }
  0x13   : > { %s416_s3 = sshll.u32 (!%p105_p10), %s121_s2, 4  ;;  %s332_s13 = scalar_lea.hbm (!%p105_p10), %s700_s1, %s423_s4 }
  0x14   : > { %s125_s20 = scalar_select %p124_p11, %s558_s9, 5  ;;  %vm239_vm0 = vcmask 1046528   ;;  %vm255_vm1 = vcmask 1045504   ;;  %vm271_vm2 = vcmask 1044480   ;;  %vm281_vm3 = vcmask 1043456  }
  0x15   : > { %vm291_vm4 = vcmask 1042432   ;;  %vm305_vm5 = vcmask 1041408   ;;  %s123_s9 = scalar_lea.vmem [#allocation2], %s416_s3  ;;  %vm315_vm6 = vcmask 130048   ;;  %s335_s17 = sshll.u32 %s332_s13, 4  ;;  %s336_s17 = int_to_ptr.hbm [resolvable:$true] %s335_s17 }
  0x16   : > { %s424_s21 = smul.u32 24, %s125_s20  ;;  %s333_s15 = sshll.u32 %s123_s9, 4  ;;  %s334_s15 = int_to_ptr.vmem [resolvable:$true] %s333_s15 }
  0x17   : > { %s319_s20 = scalar_lea.sflag [#allocation3], %s121_s2 }
  0x18   : > { %s128_s24 = scalar_lea.vmem %s699_s0, %s424_s21  ;;  %s502_s21 = sshra.s32 %s336_s17, 4  ;;  %s503_s21 = int_to_ptr.hbm [resolvable:$true] %s502_s21 }
  0x19   : > { %v134_v0 = vld [vmem:[%s128_s24 + $0x10] sm:$0x3f]  ;;  %v133_v1 = vld [vmem:[%s128_s24 + $0x8] sm:$0xff]  ;;  %v132_v2 = vld [vmem:[%s128_s24] sm:$0xff]  ;;  %s504_s22 = scalar_lea.hbm %s503_s21, 16  ;;  %p509_p1 = scmp.lt.s32.totalorder %s503_s21, %s700_s1 }
  0x1a   : > { %v140_v3 = vmul.f32 0.14251846, %v134_v0  ;;  %v157_v4 = vmul.f32 0.1513313, %v133_v1  ;;  %v138_v5 = vmul.f32 0.14251846, %v132_v2  ;;  %p505_p12 = scmp.ne.s32.totalorder %s503_s21, %s504_s22 }
  0x1b   : > { %v158_v6 = vmul.f32 0.1513313, %v134_v0  ;;  %v156_v7 = vmul.f32 0.1513313, %v132_v2  ;;  %v139_v8 = vmul.f32 0.14251846, %v133_v1 }
  0x1c   : > { %148 = vrot.lane.b32.xlu1 %v140_v3, %s568_s25  ;;  %164 = vrot.lane.b32.xlu2 %v157_v4, %s569_s26  ;;  %v176_v9 = vmul.f32 0.1543884, %v134_v0  ;;  %v175_v10 = vmul.f32 0.1543884, %v133_v1  ;;  %v174_v11 = vmul.f32 0.1543884, %v132_v2  ;;  %p506_p13 = pnand %p505_p12, %p626_p4 }
  0x1d   : > { %144 = vrot.lane.b32.xlu0 %v138_v5, %s568_s25  ;;  %v137_v12 = vmul.f32 0.12895603, %v134_v0  ;;  %v136_v13 = vmul.f32 0.12895603, %v133_v1  ;;  %v135_v14 = vmul.f32 0.12895603, %v132_v2 }
  0x1e   : > { %p507_p0 = pneg %p506_p13 }
  0x24   : > { %166 = vrot.lane.b32.xlu2 %v158_v6, %s569_s26  ;;  %162 = vrot.lane.b32.xlu1 %v156_v7, %s569_s26 }
  0x25   : > { %146 = vrot.lane.b32.xlu0 %v139_v8, %s568_s25  ;;  %s508_s25 = scalar_lea.hbm %s700_s1, 96 }
  0x26   : > { %p510_p2 = scmp.lt.s32.totalorder %s508_s25, %s504_s22 }
  0x28   : > { %p511_p3 = por %p510_p2, %p509_p1 }
  0x2a   : > { %p512_p5 = pnand %p511_p3, %p507_p0 }
  0x2c   : > { %184 = vrot.lane.b32.xlu2 %v176_v9, %s570_s27  ;;  %182 = vrot.lane.b32.xlu1 %v175_v10, %s570_s27 }
  0x2d   : > { %180 = vrot.lane.b32.xlu0 %v174_v11, %s570_s27 }
  0x34   : > { %196 = vrot.lane.b32.xlu2 %v158_v6, %s571_s28  ;;  %194 = vrot.lane.b32.xlu1 %v157_v4, %s571_s28 }
  0x35   : > { %192 = vrot.lane.b32.xlu0 %v156_v7, %s571_s28 }
  0x3c   : > { %208 = vrot.lane.b32.xlu2 %v140_v3, %s572_s29  ;;  %206 = vrot.lane.b32.xlu1 %v139_v8, %s572_s29 }
  0x3d   : > { %204 = vrot.lane.b32.xlu0 %v138_v5, %s572_s29 }
  0x44   : > { %223 = vrot.lane.b32.xlu2 %v137_v12, %s573_s30  ;;  %221 = vrot.lane.b32.xlu1 %v136_v13, %s573_s30 }
  0x45   : > { %219 = vrot.lane.b32.xlu0 %v135_v14, %s573_s30 }
  0x76   : > { %v165_v15 = vpop.permute.xlu2 %164 }
  0x7e   : > { %v167_v16 = vpop.permute.xlu2 %166 }
  0x86   : > { %v185_v19 = vpop.permute.xlu2 %184 }
  0x8e   : > { %v149_v17 = vpop.permute.xlu1 %148  ;;  %v197_v22 = vpop.permute.xlu2 %196 }
  0x8f   : > { %v145_v18 = vpop.permute.xlu0 %144  ;;  %v155_v25 = vadd.f32 %v149_v17, %v137_v12 }
  0x90   : > { %v153_v33 = vadd.f32 %v145_v18, %v135_v14 }
  0x91   : > { %v173_v26 = vadd.f32 %v167_v16, %v155_v25 }
  0x93   : > { %v191_v30 = vadd.f32 %v185_v19, %v173_v26 }
  0x95   : > { %v203_v32 = vadd.f32 %v197_v22, %v191_v30 }
  0x96   : > { %v163_v20 = vpop.permute.xlu1 %162  ;;  %v209_v27 = vpop.permute.xlu2 %208 }
  0x97   : > { %v147_v21 = vpop.permute.xlu0 %146  ;;  %v171_v37 = vadd.f32 %v163_v20, %v153_v33  ;;  %v215_v39 = vadd.f32 %v209_v27, %v203_v32 }
  0x98   : > { %v154_v31 = vadd.f32 %v147_v21, %v136_v13 }
  0x9a   : > { %v172_v35 = vadd.f32 %v165_v15, %v154_v31 }
  0x9e   : > { %v183_v23 = vpop.permute.xlu1 %182  ;;  %v224_v38 = vpop.permute.xlu2 %223 }
  0x9f   : > { %v181_v24 = vpop.permute.xlu0 %180  ;;  %v190_v40 = vadd.f32 %v183_v23, %v172_v35  ;;  %v230_v42 = vadd.f32 %v224_v38, %v215_v39 }
  0xa0   : > { %v189_v41 = vadd.f32 %v181_v24, %v171_v37 }
  0xa1   : > { %v235_v48 = vmul.f32 0.14251846, %v230_v42  ;;  %v251_v52 = vmul.f32 0.1513313, %v230_v42  ;;  %v267_v55 = vmul.f32 0.1543884, %v230_v42 }
  0xa2   : > { %v301_v13 = vmul.f32 0.12895603, %v230_v42 }
  0xa3   : > { %v243_v58 = vrot.slane %v235_v48, 1  ;;  %v259_v0 = vrot.slane %v251_v52, 2  ;;  %v275_v4 = vrot.slane %v267_v55, 3  ;;  %v285_v12 = vrot.slane %v251_v52, 4 }
  0xa4   : > { %v295_v20 = vrot.slane %v235_v48, 5 }
  0xa6   : > { %v195_v28 = vpop.permute.xlu1 %194 }
  0xa7   : > { %v193_v29 = vpop.permute.xlu0 %192  ;;  %v202_v43 = vadd.f32 %v195_v28, %v190_v40 }
  0xa8   : > { %v201_v44 = vadd.f32 %v193_v29, %v189_v41  ;;  %v309_v29 = vrot.slane %v301_v13, 6 }
  0xae   : > { %v207_v34 = vpop.permute.xlu1 %206 }
  0xaf   : > { %v205_v36 = vpop.permute.xlu0 %204  ;;  %v214_v45 = vadd.f32 %v207_v34, %v202_v43 }
  0xb0   : > { %v213_v46 = vadd.f32 %v205_v36, %v201_v44 }
  0xb6   : > { %v222_v47 = vpop.permute.xlu1 %221 }
  0xb7   : > { %v229_v49 = vadd.f32 %v222_v47, %v214_v45  ;;  %v220_v50 = vpop.permute.xlu0 %219 }
  0xb8   : > { %v228_v51 = vadd.f32 %v220_v50, %v213_v46 }
  0xb9   : > { %v234_v53 = vmul.f32 0.14251846, %v229_v49  ;;  %v250_v54 = vmul.f32 0.1513313, %v229_v49  ;;  %v266_v56 = vmul.f32 0.1543884, %v229_v49 }
  0xba   : > { %v233_v57 = vmul.f32 0.14251846, %v228_v51  ;;  %v232_v61 = vmul.f32 0.12895603, %v229_v49  ;;  %v249_v63 = vmul.f32 0.1513313, %v228_v51 }
  0xbb   : > { %v241_v59 = vrot.slane %v234_v53, 1  ;;  %v257_v60 = vrot.slane %v250_v54, 2  ;;  %v273_v2 = vrot.slane %v266_v56, 3  ;;  %v231_v3 = vmul.f32 0.12895603, %v228_v51 }
  0xbc   : > { %v240_v62 = vrot.slane %v233_v57, 1  ;;  %v283_v6 = vrot.slane %v250_v54, 4  ;;  %v256_v10 = vrot.slane %v249_v63, 2  ;;  %v265_v11 = vmul.f32 0.1543884, %v228_v51 }
  0xbd   : > { %v244_v1 = vsel %vm239_vm0, %v241_v59, %v243_v58  ;;  %v260_v8 = vsel %vm255_vm1, %v257_v60, %v259_v0  ;;  %v293_v15 = vrot.slane %v234_v53, 5  ;;  %v276_v16 = vsel %vm271_vm2, %v273_v2, %v275_v4 }
  0xbe   : > { %v248_v5 = vadd.f32 %v244_v1, %v232_v61  ;;  %v242_v7 = vsel %vm239_vm0, %v240_v62, %v241_v59  ;;  %v258_v17 = vsel %vm255_vm1, %v256_v10, %v257_v60  ;;  %v272_v18 = vrot.slane %v265_v11, 3 }
  0xbf   : > { %v247_v9 = vadd.f32 %v242_v7, %v231_v3  ;;  %v282_v19 = vrot.slane %v249_v63, 4  ;;  %v286_v23 = vsel %vm281_vm3, %v283_v6, %v285_v12  ;;  %v307_v24 = vrot.slane %v232_v61, 6 }
  0xc0   : > { %v264_v14 = vadd.f32 %v260_v8, %v248_v5  ;;  %v274_v25 = vsel %vm271_vm2, %v272_v18, %v273_v2  ;;  %v292_v26 = vrot.slane %v233_v57, 5  ;;  %v296_v30 = vsel %vm291_vm4, %v293_v15, %v295_v20 }
  0xc1   : > { %v263_v22 = vadd.f32 %v258_v17, %v247_v9  ;;  %v284_v31 = vsel %vm281_vm3, %v282_v19, %v283_v6  ;;  %v306_v32 = vrot.slane %v231_v3, 6  ;;  %v310_v35 = vsel %vm305_vm5, %v307_v24, %v309_v29 }
  0xc2   : > { %v280_v21 = vadd.f32 %v276_v16, %v264_v14  ;;  %v294_v36 = vsel %vm291_vm4, %v292_v26, %v293_v15 }
  0xc3   : > { %v279_v28 = vadd.f32 %v274_v25, %v263_v22  ;;  %v308_v39 = vsel %vm305_vm5, %v306_v32, %v307_v24 }
  0xc4   : > { %v290_v27 = vadd.f32 %v286_v23, %v280_v21 }
  0xc5   : > { %v289_v34 = vadd.f32 %v284_v31, %v279_v28 }
  0xc6   : > { %v300_v33 = vadd.f32 %v296_v30, %v290_v27 }
  0xc7   : > { %v299_v38 = vadd.f32 %v294_v36, %v289_v34 }
  0xc8   : > { %v314_v37 = vadd.f32 %v310_v35, %v300_v33 }
  0xc9   : > { %v313_v40 = vadd.f32 %v308_v39, %v299_v38 }
  0xca   : > { %317 = vst.msk [vmem:[%s123_s9 + $0x8] sm:$0xff] %vm315_vm6, %v314_v37 }
  0xcb   : > { %316 = vst.msk [vmem:[%s123_s9] sm:$0xff] %vm315_vm6, %v313_v40 }
  0xcc   : > { %515 = shalt.err (!%p512_p5)
}
  0xcd   : > { %s574_s28 = smov 128   ;;  %s575_s29 = smov 8  }
  0xce   : > { %425 = dma.vmem_to_hbm [thread:$0]  (%p626_p4), %s334_s15, 256, %s336_s17, %s319_s20, %s574_s28, %s574_s28, %s575_s29  }
  0xcf PF: > { %p431_p6 = scmp.ge.s32.totalorder %s566_s11, 2  ;;  %s350_s30 = sand.u32 1, %s546_s6  }
  0xd0   : > { %s351_s2 = scalar_lea.sflag [#allocation3], %s350_s30 }
  0xd1   : > { %p428_p7 = pnand %p431_p6, %p633_p8 }
  0xd3   : > { %p429_p9 = pneg %p428_p7 }
  0xd5   : > { %541 = dma.done.wait (%p429_p9), %s351_s2, 256  }
  0xd6   : > { %543 = vsyncadd (%p429_p9), %s351_s2, 4294967040  ;;  %s14_s11 = sadd.s32 1, %s566_s11   ;;  %s703_s6 = smov %s550_s7 }
  0xd7   : > { %p11_p10 = scmp.ge.s32.totalorder %s14_s11, 8   ;;  %s704_s7 = smov %s554_s8 }
  0xd8   : > { %s705_s8 = smov %s639_s19  ;;  %s706_s9 = smov %s562_s10 }
  0xd9   : > { %s707_s10 = smov %s709_s14  ;;  %13 = sbr.rel (!%p11_p10) target bundleno = 4 (0x4), region = 60 }
  0xde   :  { %357 = vsyncpa [#allocation3], 1 }
  0xdf   :  { %359 = vsyncpa [#allocation3 + $0x1], 1 }

</bundles_post_ra>
